<compile_context>
chip_gen: v6e
topology: v6e:2x2x1
jax: 0.10.0
libtpu: 0.0.40
codegen_flags: <defaults>
</compile_context>

<pallas_src>
import functools

import jax
import jax.numpy as jnp
from jax.experimental import pallas as pl
from jax.experimental.pallas import tpu as pltpu


# VMEM budget for the double-buffered input blocks (2 inputs x 2 buffers),
# conservative for v7x's 64 MiB VMEM; also fine on v5e/v6e (128 MiB).
_INPUT_VMEM_BUDGET = 32 * 1024 * 1024
_MAX_BLOCK_ROWS = 1024
_VMEM_LIMIT_BYTES = 48 * 1024 * 1024


def _round_up(x, m):
    return ((x + m - 1) // m) * m


def _cdiv(a, b):
    return -(-a // b)


def _ce_onehot_kernel(preds_ref, labels_ref, out_ref, *,
                      block_rows, n_rows, inner_steps):
    """Accumulate per-row soft-CE losses for one row super-block.

    grid = (P, S): P outer super-blocks ("parallel"), S inner row tiles
    ("arbitrary").  The (1, block_rows, 1) output block stays resident across
    the inner axis and is used directly as the accumulator.
    """
    p = pl.program_id(0)
    s = pl.program_id(1)

    @pl.when(s == 0)
    def _():
        out_ref[...] = jnp.zeros_like(out_ref)

    logits = preds_ref[...].astype(jnp.float32)    # (tb, C)
    labels = labels_ref[...].astype(jnp.float32)   # (tb, C)

    # numerically-stable log_softmax along the class (lane) axis
    m = jnp.max(logits, axis=-1, keepdims=True)
    shifted = logits - m
    lse = jnp.log(jnp.sum(jnp.exp(shifted), axis=-1, keepdims=True))
    logp = shifted - lse

    # per-row soft cross entropy (lane reduce only; no reduce-to-scalar here)
    row_loss = jnp.sum(-labels * logp, axis=-1, keepdims=True)   # (tb, 1)

    # mask rows past the end of the array (partial / duplicated trailing tiles)
    tile_idx = p * inner_steps + s
    row_ids = tile_idx * block_rows + jax.lax.broadcasted_iota(
        jnp.int32, (block_rows, 1), 0)
    row_loss = jnp.where(row_ids < n_rows, row_loss, 0.0)

    out_ref[...] += row_loss[None, :, :]


def cross_entropy_loss_one_hot(preds, labels, *, block_rows=None):
    """mean(sum(-labels * log_softmax(preds, -1), -1)) via a Pallas TPU kernel."""
    assert preds.shape == labels.shape
    num_classes = preds.shape[-1]
    preds2d = preds.reshape(-1, num_classes)
    labels2d = labels.reshape(-1, num_classes)
    n_rows = preds2d.shape[0]

    # --- row tile: biggest that fits the (v7x-safe) VMEM budget -------------
    if block_rows is None:
        bytes_per_row = 2 * num_classes * (
            preds2d.dtype.itemsize + labels2d.dtype.itemsize)
        tb = _INPUT_VMEM_BUDGET // max(1, bytes_per_row)
        tb = max(16, (min(_MAX_BLOCK_ROWS, tb) // 16) * 16)
    else:
        tb = max(8, (int(block_rows) // 8) * 8)
    tb = max(8, min(tb, _round_up(n_rows, 8)))   # never larger than needed
    # TODO(synk): for vocab-scale class counts (C >~ 32K) add a class-dim grid
    # axis with online max/LSE accumulators instead of shrinking the row tile.

    n_tiles = _cdiv(n_rows, tb)
    p_blocks = min(2, n_tiles)          # >=2 super-blocks -> both TCs on v7x
    inner_steps = _cdiv(n_tiles, p_blocks)

    def in_index_map(p, s):
        # Clamp duplicated trailing tiles (p*S + s >= n_tiles) into bounds;
        # their rows are fully masked out inside the kernel.
        return (jnp.minimum(p * inner_steps + s, n_tiles - 1), 0)

    kernel = functools.partial(
        _ce_onehot_kernel,
        block_rows=tb, n_rows=n_rows, inner_steps=inner_steps)

    partials = pl.pallas_call(
        kernel,
        out_shape=jax.ShapeDtypeStruct((p_blocks, tb, 1), jnp.float32),
        grid_spec=pltpu.PrefetchScalarGridSpec(
            num_scalar_prefetch=0,
            grid=(p_blocks, inner_steps),
            in_specs=[
                pl.BlockSpec((tb, num_classes), in_index_map),
                pl.BlockSpec((tb, num_classes), in_index_map),
            ],
            out_specs=pl.BlockSpec((1, tb, 1), lambda p, s: (p, 0, 0)),
        ),
        compiler_params=pltpu.CompilerParams(
            dimension_semantics=("parallel", "arbitrary"),
            vmem_limit_bytes=_VMEM_LIMIT_BYTES,
        ),
    )(preds2d, labels2d)

    # tiny final reduction + mean in plain JAX
    return jnp.sum(partials) / jnp.float32(n_rows)


def _reference(preds, labels):
    logp = jax.nn.log_softmax(preds.astype(jnp.float32), axis=-1)
    return jnp.mean(jnp.sum(-labels.astype(jnp.float32) * logp, axis=-1))


if __name__ == "__main__":
    key = jax.random.PRNGKey(0)
    k1, k2, k3, k4, k5, k6 = jax.random.split(key, 6)

    # test 1: simple 2-D case
    preds1 = jax.random.normal(k1, (16, 32), dtype=jnp.float32)
    labels1 = jax.nn.softmax(
        4.0 * jax.random.normal(k2, (16, 32), dtype=jnp.float32), axis=-1)
    out1 = cross_entropy_loss_one_hot(preds1, labels1)
    jax.block_until_ready(out1)
    ref1 = _reference(preds1, labels1)
    assert jnp.allclose(out1, ref1, atol=1e-5, rtol=1e-5), (out1, ref1)

    # test 2: 3-D input, row count not a multiple of the tile (exercises mask)
    preds2 = jax.random.normal(k3, (3, 5, 32), dtype=jnp.float32)
    labels2 = jax.nn.softmax(
        4.0 * jax.random.normal(k4, (3, 5, 32), dtype=jnp.float32), axis=-1)
    out2 = cross_entropy_loss_one_hot(preds2, labels2)
    jax.block_until_ready(out2)
    ref2 = _reference(preds2, labels2)
    assert jnp.allclose(out2, ref2, atol=1e-5, rtol=1e-5), (out2, ref2)

    # test 3: multi-tile / multi-super-block path (forced small tile)
    preds3 = jax.random.normal(k5, (48, 32), dtype=jnp.float32)
    labels3 = jax.nn.softmax(
        4.0 * jax.random.normal(k6, (48, 32), dtype=jnp.float32), axis=-1)
    out3 = cross_entropy_loss_one_hot(preds3, labels3, block_rows=16)
    jax.block_until_ready(out3)
    ref3 = _reference(preds3, labels3)
    assert jnp.allclose(out3, ref3, atol=1e-5, rtol=1e-5), (out3, ref3)

    print("KERNEL_OK")
</pallas_src>

<mosaic_0001>
module attributes {stable_mosaic.version = 11 : i64} {
  func.func @_ce_onehot_kernel(%arg0: i32, %arg1: i32, %arg2: memref<16x32xf32, #tpu.memory_space<vmem>>, %arg3: memref<16x32xf32, #tpu.memory_space<vmem>>, %arg4: memref<1x16x1xf32, #tpu.memory_space<vmem>>) attributes {dimension_semantics = [#tpu.dimension_semantics<parallel>, #tpu.dimension_semantics<arbitrary>], iteration_bounds = array<i64: 1, 1>, scalar_prefetch = 0 : i64, scratch_operands = 0 : i64, tpu.core_type = #tpu.core_type<tc>, window_params = [{transform_indices = @transform_0, window_bounds = array<i64: 16, 32>}, {transform_indices = @transform_1, window_bounds = array<i64: 16, 32>}, {transform_indices = @transform_2, window_bounds = array<i64: 1, 16, 1>}]} {
    %c0_i32 = arith.constant 0 : i32
    %0 = arith.cmpi eq, %arg1, %c0_i32 : i32
    %1 = arith.extui %0 : i1 to i32
    %c0_i32_0 = arith.constant 0 : i32
    %2 = arith.cmpi ne, %1, %c0_i32_0 : i32
    scf.if %2 {
      %cst_15 = arith.constant 0.000000e+00 : f32
      %34 = vector.broadcast %cst_15 : f32 to vector<1x16x1xf32>
      %c0_16 = arith.constant 0 : index
      %c0_17 = arith.constant 0 : index
      %c0_18 = arith.constant 0 : index
      %35 = vector.load %arg4[%c0_16, %c0_17, %c0_18] : memref<1x16x1xf32, #tpu.memory_space<vmem>>, vector<1x16x1xf32>
      tpu.vector_store %arg4[%c0_16, %c0_17, %c0_18], %34 {strides = array<i32>} : memref<1x16x1xf32, #tpu.memory_space<vmem>>, vector<1x16x1xf32>,
    } else {
    }
    %c0 = arith.constant 0 : index
    %c0_1 = arith.constant 0 : index
    %3 = vector.load %arg2[%c0, %c0_1] : memref<16x32xf32, #tpu.memory_space<vmem>>, vector<16x32xf32>
    %c0_2 = arith.constant 0 : index
    %c0_3 = arith.constant 0 : index
    %4 = vector.load %arg3[%c0_2, %c0_3] : memref<16x32xf32, #tpu.memory_space<vmem>>, vector<16x32xf32>
    %cst = arith.constant dense<0xFF800000> : vector<16xf32>
    %5 = vector.multi_reduction <maximumf>, %3, %cst [1] : vector<16x32xf32> to vector<16xf32>
    %6 = vector.shape_cast %5 : vector<16xf32> to vector<16x1xf32>
    %7 = vector.broadcast %6 : vector<16x1xf32> to vector<16x32xf32>
    %8 = arith.subf %3, %7 : vector<16x32xf32>
    %9 = math.exp %8 : vector<16x32xf32>
    %cst_4 = arith.constant dense<0.000000e+00> : vector<16xf32>
    %10 = vector.multi_reduction <add>, %9, %cst_4 [1] : vector<16x32xf32> to vector<16xf32>
    %11 = vector.shape_cast %10 : vector<16xf32> to vector<16x1xf32>
    %12 = math.log %11 : vector<16x1xf32>
    %13 = vector.broadcast %12 : vector<16x1xf32> to vector<16x32xf32>
    %14 = arith.subf %8, %13 : vector<16x32xf32>
    %cst_5 = arith.constant 0.000000e+00 : f32
    %15 = vector.broadcast %cst_5 : f32 to vector<16x32xf32>
    %16 = arith.subf %15, %4 : vector<16x32xf32>
    %17 = arith.mulf %16, %14 : vector<16x32xf32>
    %cst_6 = arith.constant dense<0.000000e+00> : vector<16xf32>
    %18 = vector.multi_reduction <add>, %17, %cst_6 [1] : vector<16x32xf32> to vector<16xf32>
    %19 = vector.shape_cast %18 : vector<16xf32> to vector<16x1xf32>
    %c1_i32 = arith.constant 1 : i32
    %20 = arith.muli %arg0, %c1_i32 : i32
    %21 = arith.addi %20, %arg1 : i32
    %c16_i32 = arith.constant 16 : i32
    %22 = arith.muli %21, %c16_i32 : i32
    %23 = tpu.iota {dimensions = array<i32: 0>} : vector<16x1xi32>
    %24 = vector.broadcast %22 : i32 to vector<16x1xi32>
    %25 = arith.addi %24, %23 : vector<16x1xi32>
    %c16_i32_7 = arith.constant 16 : i32
    %26 = vector.broadcast %c16_i32_7 : i32 to vector<16x1xi32>
    %27 = arith.cmpi slt, %25, %26 : vector<16x1xi32>
    %cst_8 = arith.constant 0.000000e+00 : f32
    %28 = vector.broadcast %cst_8 : f32 to vector<16x1xf32>
    %29 = arith.select %27, %19, %28 : vector<16x1xi1>, vector<16x1xf32>
    %c0_9 = arith.constant 0 : index
    %c0_10 = arith.constant 0 : index
    %c0_11 = arith.constant 0 : index
    %30 = vector.load %arg4[%c0_9, %c0_10, %c0_11] : memref<1x16x1xf32, #tpu.memory_space<vmem>>, vector<1x16x1xf32>
    %31 = vector.shape_cast %29 : vector<16x1xf32> to vector<1x16x1xf32>
    %32 = arith.addf %30, %31 : vector<1x16x1xf32>
    %c0_12 = arith.constant 0 : index
    %c0_13 = arith.constant 0 : index
    %c0_14 = arith.constant 0 : index
    %33 = vector.load %arg4[%c0_12, %c0_13, %c0_14] : memref<1x16x1xf32, #tpu.memory_space<vmem>>, vector<1x16x1xf32>
    tpu.vector_store %arg4[%c0_12, %c0_13, %c0_14], %32 {strides = array<i32>} : memref<1x16x1xf32, #tpu.memory_space<vmem>>, vector<1x16x1xf32>,
    return
  }
  func.func @transform_0(%arg0: i32, %arg1: i32) -> (i32, i32) {
    %c1_i32 = arith.constant 1 : i32
    %0 = arith.muli %arg0, %c1_i32 : i32
    %1 = arith.addi %0, %arg1 : i32
    %c0_i32 = arith.constant 0 : i32
    %2 = arith.minsi %1, %c0_i32 : i32
    %c0_i32_0 = arith.constant 0 : i32
    %c0_i32_1 = arith.constant 0 : i32
    return %2, %c0_i32_0 : i32, i32
  }
  func.func @transform_1(%arg0: i32, %arg1: i32) -> (i32, i32) {
    %c1_i32 = arith.constant 1 : i32
    %0 = arith.muli %arg0, %c1_i32 : i32
    %1 = arith.addi %0, %arg1 : i32
    %c0_i32 = arith.constant 0 : i32
    %2 = arith.minsi %1, %c0_i32 : i32
    %c0_i32_0 = arith.constant 0 : i32
    %c0_i32_1 = arith.constant 0 : i32
    return %2, %c0_i32_0 : i32, i32
  }
  func.func @transform_2(%arg0: i32, %arg1: i32) -> (i32, i32, i32) {
    %c0_i32 = arith.constant 0 : i32
    %c0_i32_0 = arith.constant 0 : i32
    %c0_i32_1 = arith.constant 0 : i32
    return %arg0, %c0_i32, %c0_i32_0 : i32, i32, i32
  }
}

</mosaic_0001>

<bundles_post_ra>
// kernel: tpu_custom_call.1
= control target key start
LH: loop header
LB: loop body
LE: loop exit
PB: predicated region body
PF: predicated region fallthrough
CT: control target
= control target key end

     0   :  { %7 = vsyncpa [#allocation3], 0  ;;  %s245_s0 = inlined_call_operand.hbm [shape: f32[16,32], index: 0, kind: input, shape index: {}]   ;;  %s246_s1 = inlined_call_operand.hbm [shape: f32[16,32], index: 1, kind: input, shape index: {}]   ;;  %s247_s2 = inlined_call_operand.vmem [shape: f32[1,16,1], index: 2, kind: output, shape index: {}]  }
   0x1   :  { %8 = vsyncpa [#allocation5], 0  ;;  %s191_s9 = smov [#allocation2]  }
   0x2   :  { %s20_s10 = sshll.u32 %s191_s9, 4  ;;  %s21_s10 = int_to_ptr.vmem [resolvable:$true] %s20_s10 }
   0x3   :  { %s155_s11 = scalar_lea.vmem %s21_s10, 256  ;;  %p160_p1 = scmp.lt.s32.totalorder %s21_s10, %s21_s10 }
   0x4   :  { %p156_p0 = scmp.ne.s32.totalorder %s21_s10, %s155_s11  ;;  %p161_p2 = scmp.lt.s32.totalorder %s155_s11, %s155_s11 }
   0x6   :  { %p162_p3 = por %p161_p2, %p160_p1 }
   0x8   :  { %p163_p4 = pnand %p162_p3, %p156_p0 }
   0xa   :  { %166 = shalt.err (!%p163_p4)
}
   0xb   :  { %s192_s12 = smov 128   ;;  %s193_s13 = smov 8  }
   0xc   :  { %26 = dma.hbm_to_vmem [thread:$0]  %s245_s0, 256, %s21_s10, [#allocation3], %s192_s12, %s192_s12, %s193_s13  }
   0xd   :  { %s194_s16 = smov [#allocation4]  }
   0xe   :  { %s38_s17 = sshll.u32 %s194_s16, 4  ;;  %s39_s17 = int_to_ptr.vmem [resolvable:$true] %s38_s17 }
   0xf   :  { %s175_s18 = scalar_lea.vmem %s39_s17, 256  ;;  %p180_p6 = scmp.lt.s32.totalorder %s39_s17, %s39_s17 }
  0x10   :  { %p176_p5 = scmp.ne.s32.totalorder %s39_s17, %s175_s18  ;;  %p181_p7 = scmp.lt.s32.totalorder %s175_s18, %s175_s18 }
  0x12   :  { %p182_p8 = por %p181_p7, %p180_p6 }
  0x14   :  { %p183_p9 = pnand %p182_p8, %p176_p5 }
  0x16   :  { %186 = shalt.err (!%p183_p9)
}
  0x17   :  { %44 = dma.hbm_to_vmem [thread:$0]  %s246_s1, 256, %s39_s17, [#allocation5], %s192_s12, %s192_s12, %s193_s13  }
  0x18   :  { %187 = dma.done.wait [#allocation3], 256  }
  0x19   :  { %188 = vsyncadd [#allocation3], 4294967040 }
  0x1a   :  { %189 = dma.done.wait [#allocation5], 256  }
  0x1b   :  { %190 = vsyncadd [#allocation5], 4294967040  ;;  %vm70_vm0 = vcmask 261120   ;;  %v66_v0 = vld [vmem:[#allocation2] sm:$0xff]  ;;  %v67_v1 = vld [vmem:[#allocation2 + $0x8] sm:$0xff]  ;;  %vm63_vm1 = vcmask 7168  }
  0x1c   :  { %v71_v2 = vsel %vm70_vm0, %v66_v0, -inf  ;;  %v74_v3 = vsel %vm70_vm0, %v67_v1, -inf  ;;  %v195_v14 = vmov 0.0   ;;  %v68_v17 = vld [vmem:[#allocation4] sm:$0xff]  ;;  %v69_v21 = vld [vmem:[#allocation4 + $0x8] sm:$0xff] }
  0x1d   :  { %72 = vmax.xlane.f32.xlu0 %v71_v2  ;;  %64 = vst.msk [vmem:[%s247_s2] sm:$0xff] %vm63_vm1, %v195_v14  ;;  %65 = vst.msk [vmem:[%s247_s2 + $0x8] sm:$0xff] %vm63_vm1, %v195_v14  ;;  %v95_v20 = vsub.f32 0.0, %v68_v17  ;;  %v96_v26 = vsub.f32 0.0, %v69_v21 }
  0x21   :  { %75 = vmax.xlane.f32.xlu0 %v74_v3 }
  0x24   :  { %v117_v31 = vld [vmem:[%s247_s2] sm:$0xff]  ;;  %v118_v34 = vld [vmem:[%s247_s2 + $0x8] sm:$0xff] }
  0xa6   :  { %v73_v4 = vpop.xlane.xlu0 %72 }
  0xa7   :  { %v77_v5 = vsub.f32 %v66_v0, %v73_v4 }
  0xa9   :  { %v79_v6 = vmul.f32 1.442695, %v77_v5 }
  0xaa   :  { %v76_v7 = vpop.xlane.xlu0 %75 }
  0xab   :  { %139 = vpow2.f32 %v79_v6  ;;  %v78_v8 = vsub.f32 %v67_v1, %v76_v7 }
  0xad   :  { %v81_v9 = vmul.f32 1.442695, %v78_v8 }
  0xaf   :  { %141 = vpow2.f32 %v81_v9 }
  0xb8   :  { %v140_v10 = vpop.eup %139 }
  0xb9   :  { %v83_v11 = vsel %vm70_vm0, %v140_v10, 0.0 }
  0xba   :  { %84 = vadd.xlane.f32.xlu1 %v83_v11 }
  0xbc   :  { %v142_v12 = vpop.eup %141 }
  0xbd   :  { %v86_v13 = vsel %vm70_vm0, %v142_v12, 0.0 }
  0xbe   :  { %87 = vadd.xlane.f32.xlu1 %v86_v13 }
 0x143   :  { %v85_v15 = vpop.xlane.xlu1 %84 }
 0x144   :  { %143 = vlog2.f32 %v85_v15 }
 0x147   :  { %v88_v16 = vpop.xlane.xlu1 %87 }
 0x148   :  { %145 = vlog2.f32 %v88_v16 }
 0x151   :  { %v144_v18 = vpop.eup %143 }
 0x152   :  { %v90_v19 = vmul.f32 0.6931472, %v144_v18 }
 0x154   :  { %v93_v22 = vsub.f32 %v77_v5, %v90_v19 }
 0x155   :  { %v146_v23 = vpop.eup %145 }
 0x156   :  { %v92_v24 = vmul.f32 0.6931472, %v146_v23  ;;  %v97_v25 = vmul.f32 %v95_v20, %v93_v22 }
 0x158   :  { %v99_v27 = vsel %vm70_vm0, %v97_v25, 0.0  ;;  %v94_v28 = vsub.f32 %v78_v8, %v92_v24 }
 0x159   :  { %100 = vadd.xlane.f32.xlu0 %v99_v27 }
 0x15a   :  { %v98_v29 = vmul.f32 %v96_v26, %v94_v28 }
 0x15c   :  { %v102_v30 = vsel %vm70_vm0, %v98_v29, 0.0 }
 0x15d   :  { %103 = vadd.xlane.f32.xlu1 %v102_v30 }
 0x1e2   :  { %v101_v32 = vpop.xlane.xlu0 %100 }
 0x1e3   :  { %v119_v33 = vadd.f32 %v117_v31, %v101_v32 }
 0x1e5   :  { %122 = vst.msk [vmem:[%s247_s2] sm:$0xff] %vm63_vm1, %v119_v33 }
 0x1e6   :  { %v104_v35 = vpop.xlane.xlu1 %103 }
 0x1e7   :  { %v120_v36 = vadd.f32 %v118_v34, %v104_v35 }
 0x1e9   :  { %123 = vst.msk [vmem:[%s247_s2 + $0x8] sm:$0xff] %vm63_vm1, %v120_v36 }
 0x1ea   :  { %128 = vsyncpa [#allocation3], 1 }
 0x1eb   :  { %129 = vsyncpa [#allocation5], 1 }

</bundles_post_ra>
